<compile_context>
chip_gen: v7x
topology: tpu7x:2x2x1
jax: 0.10.0
libtpu: 0.0.40
codegen_flags: <defaults>
</compile_context>

<pallas_src>
import functools

import jax
import jax.numpy as jnp
from jax.experimental import pallas as pl
from jax.experimental.pallas import tpu as pltpu


def _cross_kernel(*refs, R, inv_T):
    """Accumulate cross[m, n] = sum_{b, c} log_softmax_m * softmax_n.

    refs = (x_0, ..., x_{R-1}, cross_out); each x_r is a (TB, C) tile of
    requirement r's logits, cross_out is the (R, R) partial accumulator for
    the current "parallel" grid slice (resident across the batch axis).
    """
    x_refs = refs[:R]
    cross_ref = refs[R]

    b = pl.program_id(1)

    @pl.when(b == 0)
    def _init():
        cross_ref[...] = jnp.zeros_like(cross_ref)

    # Temperature softmax over the class (lane) axis, one exp per element.
    logps = []
    probs = []
    for r in range(R):
        x = x_refs[r][...].astype(jnp.float32) * inv_T          # (TB, C)
        z = x - jnp.max(x, axis=-1, keepdims=True)
        e = jnp.exp(z)
        s = jnp.sum(e, axis=-1, keepdims=True)                  # (TB, 1)
        logps.append(z - jnp.log(s))
        probs.append(e * pl.reciprocal(s))                      # exact recip

    # Pairwise contractions without any R^2-sized [.., TB, C] intermediate:
    # each pair is a fused multiply + (lane, sublane) reduction to a (1, 1)
    # partial that is scattered into the (R, R) update with a one-hot mask.
    rr = jax.lax.broadcasted_iota(jnp.int32, (R, R), 0)
    cc = jax.lax.broadcasted_iota(jnp.int32, (R, R), 1)
    upd = jnp.zeros((R, R), jnp.float32)
    for m in range(R):
        for n in range(R):
            prod = logps[m] * probs[n]                          # (TB, C)
            s_mn = jnp.sum(prod, axis=1, keepdims=True)         # (TB, 1)
            s_mn = jnp.sum(s_mn, axis=0, keepdims=True)         # (1, 1)
            onehot = ((rr == m) & (cc == n)).astype(jnp.float32)
            upd = upd + onehot * s_mn
    cross_ref[...] = cross_ref[...] + upd


def _focal_regularizer(loss1, loss2, beta, threshold, method):
    """Elementwise JAX transcription of the PyTorch `_regularizer`."""
    d = loss1 - loss2
    if method in ('exp', 'multiply'):
        val = beta * jnp.exp(d) - 1.0
    elif method == 'switch':
        val = d * jax.nn.sigmoid(beta * d)
    elif method == 'identity':
        val = beta * d
    elif method == 'exp_in':
        val = jnp.exp(beta * d) - 1.0
    elif method == 'bi_exp':
        return beta * jnp.exp(d) - 1.0
    elif method == 'bi_switch':
        return d * jax.nn.sigmoid(beta * d)
    elif method == 'bi_exp_in':
        val = 2.0 * jnp.exp(beta * d) - 1.0
    elif method == 'bibi_exp_in':
        return 2.0 * jnp.exp(beta * d) - 1.0
    elif method == 'log':
        val = jnp.log(beta * jnp.maximum(d, 0.0) + 1.0)
    else:
        raise NotImplementedError(method)
    return jnp.where(d > threshold, val, 0.0)


def _pick_batch_tile(B, R, C, vmem_budget_bytes=16 << 20):
    # ~5 live f32 copies of each (batch-row x C) slab per requirement
    # (2x double-buffered input + logp + p + transients).
    bytes_per_row = 20 * R * max(C, 1)
    cap = max(8, vmem_budget_bytes // bytes_per_row)
    candidates = [tb for tb in range(8, min(B, cap) + 1, 8) if B % tb == 0]
    if candidates:
        return max(candidates)
    return B  # a full-batch block is always a legal BlockSpec


def aux_out_ssa_loss(dict_loss, dict_out, requirements, *, reg_method='log',
                     beta=0.5, threshold=1e-12, T=5.0, batch_tile=None):
    """Pallas implementation of AUX_OUT_SSALoss.forward -> {req: ssa_loss}."""
    xs = [jnp.asarray(dict_out[r]) for r in requirements]
    R = len(requirements)
    B, C = xs[0].shape
    for x in xs:
        assert x.shape == (B, C), "all requirement outputs must share (B, C)"

    if batch_tile is None:
        batch_tile = _pick_batch_tile(B, R, C)
    assert B % batch_tile == 0 and (batch_tile % 8 == 0 or batch_tile == B), \
        "batch_tile must divide B and be a multiple of 8 (or equal B)"
    num_tiles = B // batch_tile
    # Leading "parallel" axis: lets v7x's two TensorCores each reduce half of
    # the batch into their own (R, R) partial; harmless (serial) on v5e/v6e.
    P = 2 if (num_tiles % 2 == 0 and num_tiles >= 2) else 1
    NB = num_tiles // P

    def x_index(p, b):
        return (p * NB + b, 0)

    kernel = functools.partial(_cross_kernel, R=R, inv_T=1.0 / float(T))

    cross_parts = pl.pallas_call(
        kernel,
        out_shape=jax.ShapeDtypeStruct((P, R, R), jnp.float32),
        grid=(P, NB),
        in_specs=[pl.BlockSpec((batch_tile, C), x_index) for _ in range(R)],
        out_specs=pl.BlockSpec((None, R, R), lambda p, b: (p, 0, 0)),
        compiler_params=pltpu.CompilerParams(
            dimension_semantics=("parallel", "arbitrary"),
            vmem_limit_bytes=48 * 1024 * 1024),
    )(*xs)

    # Tiny O(R^2) epilogue in plain JAX.
    cross = jnp.sum(cross_parts, axis=0)                        # (R, R)
    ent = jnp.diagonal(cross)                                   # ent[n] = sum p_n log p_n
    kl = (ent[None, :] - cross) * (float(T) * float(T) / float(B * C))
    losses = jnp.stack([jnp.asarray(dict_loss[r], jnp.float32).reshape(())
                        for r in requirements])                 # (R,)
    focal = _focal_regularizer(losses[:, None], losses[None, :],
                               float(beta), float(threshold), reg_method)
    ssa = jnp.sum(focal * kl, axis=1)                           # (R,)
    return {r: ssa[i] for i, r in enumerate(requirements)}


def _reference(dict_loss, dict_out, requirements, *, reg_method='log',
               beta=0.5, threshold=1e-12, T=5.0):
    """Pure-JAX per-pair mirror of the PyTorch forward."""
    ssa = {}
    for m in requirements:
        acc = jnp.float32(0.0)
        lm = jnp.asarray(dict_loss[m], jnp.float32)
        logp_m = jax.nn.log_softmax(
            jnp.asarray(dict_out[m], jnp.float32) / T, axis=1)
        for n in requirements:
            ln = jnp.asarray(dict_loss[n], jnp.float32)
            p_n = jax.nn.softmax(
                jnp.asarray(dict_out[n], jnp.float32) / T, axis=1)
            focal = _focal_regularizer(lm, ln, beta, threshold, reg_method)
            kl = jnp.mean(p_n * (jnp.log(p_n) - logp_m)) * (T * T)
            acc = acc + focal * kl
        ssa[m] = acc
    return ssa


if __name__ == "__main__":
    requirements = ["rgb", "depth", "flow"]
    B, C = 32, 128   # small batch, lane-dense class axis

    key = jax.random.PRNGKey(0)
    k_out, k_loss = jax.random.split(key)
    out_keys = jax.random.split(k_out, len(requirements))

    dict_out = {r: jax.random.normal(out_keys[i], (B, C), jnp.float32)
                for i, r in enumerate(requirements)}
    loss_vals = jax.random.uniform(k_loss, (len(requirements),), jnp.float32,
                                   minval=0.2, maxval=2.0)
    dict_loss = {r: loss_vals[i] for i, r in enumerate(requirements)}

    # Exercise the multi-tile grid (batch_tile=8 -> grid (2, 2), accumulation
    # across batch tiles + two "parallel" partials) and two regularizers.
    for method in ("log", "exp"):
        got = aux_out_ssa_loss(dict_loss, dict_out, requirements,
                               reg_method=method, beta=0.5, threshold=1e-12,
                               T=5.0, batch_tile=8)
        got = jax.block_until_ready(got)
        ref = _reference(dict_loss, dict_out, requirements,
                         reg_method=method, beta=0.5, threshold=1e-12, T=5.0)
        for r in requirements:
            assert jnp.allclose(got[r], ref[r], rtol=1e-4, atol=1e-5), (method, r)

    # bf16 logits are supported (cast to f32 on load inside the kernel);
    # smoke-test that path plus the auto batch-tile / single-tile grid.
    dict_out_bf16 = {r: v.astype(jnp.bfloat16) for r, v in dict_out.items()}
    got_bf16 = aux_out_ssa_loss(dict_loss, dict_out_bf16, requirements)
    got_bf16 = jax.block_until_ready(got_bf16)
    assert all(bool(jnp.isfinite(v)) for v in got_bf16.values())

    print("KERNEL_OK")
</pallas_src>

<mosaic_0001>
module attributes {stable_mosaic.version = 11 : i64} {
  func.func @_cross_kernel(%arg0: i32, %arg1: i32, %arg2: memref<8x128xf32, #tpu.memory_space<vmem>>, %arg3: memref<8x128xf32, #tpu.memory_space<vmem>>, %arg4: memref<8x128xf32, #tpu.memory_space<vmem>>, %arg5: memref<1x3x3xf32, #tpu.memory_space<vmem>>) attributes {dimension_semantics = [#tpu.dimension_semantics<parallel>, #tpu.dimension_semantics<arbitrary>], iteration_bounds = array<i64: 2, 2>, scalar_prefetch = 0 : i64, scratch_operands = 0 : i64, tpu.core_type = #tpu.core_type<tc>, window_params = [{transform_indices = @transform_0, window_bounds = array<i64: 8, 128>}, {transform_indices = @transform_1, window_bounds = array<i64: 8, 128>}, {transform_indices = @transform_2, window_bounds = array<i64: 8, 128>}, {transform_indices = @transform_3, window_bounds = array<i64: 1, 3, 3>}]} {
    %c0_i32 = arith.constant 0 : i32
    %0 = arith.cmpi eq, %arg1, %c0_i32 : i32
    %1 = arith.extui %0 : i1 to i32
    %c0_i32_0 = arith.constant 0 : i32
    %2 = arith.cmpi ne, %1, %c0_i32_0 : i32
    scf.if %2 {
      %cst_55 = arith.constant 0.000000e+00 : f32
      %195 = vector.broadcast %cst_55 : f32 to vector<3x3xf32>
      %c0_56 = arith.constant 0 : index
      %c0_57 = arith.constant 0 : index
      %c0_58 = arith.constant 0 : index
      %196 = vector.load %arg5[%c0_56, %c0_57, %c0_58] : memref<1x3x3xf32, #tpu.memory_space<vmem>>, vector<1x3x3xf32>
      %197 = vector.shape_cast %196 : vector<1x3x3xf32> to vector<3x3xf32>
      %198 = vector.shape_cast %195 : vector<3x3xf32> to vector<1x3x3xf32>
      tpu.vector_store %arg5[%c0_56, %c0_57, %c0_58], %198 {strides = array<i32>} : memref<1x3x3xf32, #tpu.memory_space<vmem>>, vector<1x3x3xf32>,
    } else {
    }
    %c0 = arith.constant 0 : index
    %c0_1 = arith.constant 0 : index
    %3 = vector.load %arg2[%c0, %c0_1] : memref<8x128xf32, #tpu.memory_space<vmem>>, vector<8x128xf32>
    %cst = arith.constant 2.000000e-01 : f32
    %4 = vector.broadcast %cst : f32 to vector<8x128xf32>
    %5 = arith.mulf %3, %4 : vector<8x128xf32>
    %cst_2 = arith.constant dense<0xFF800000> : vector<8xf32>
    %6 = vector.multi_reduction <maximumf>, %5, %cst_2 [1] : vector<8x128xf32> to vector<8xf32>
    %7 = vector.shape_cast %6 : vector<8xf32> to vector<8x1xf32>
    %8 = vector.broadcast %7 : vector<8x1xf32> to vector<8x128xf32>
    %9 = arith.subf %5, %8 : vector<8x128xf32>
    %10 = math.exp %9 : vector<8x128xf32>
    %cst_3 = arith.constant dense<0.000000e+00> : vector<8xf32>
    %11 = vector.multi_reduction <add>, %10, %cst_3 [1] : vector<8x128xf32> to vector<8xf32>
    %12 = vector.shape_cast %11 : vector<8xf32> to vector<8x1xf32>
    %13 = math.log %12 : vector<8x1xf32>
    %14 = vector.broadcast %13 : vector<8x1xf32> to vector<8x128xf32>
    %15 = arith.subf %9, %14 : vector<8x128xf32>
    %16 = tpu.reciprocal %12 : vector<8x1xf32> -> vector<8x1xf32>
    %17 = vector.broadcast %16 : vector<8x1xf32> to vector<8x128xf32>
    %18 = arith.mulf %10, %17 : vector<8x128xf32>
    %c0_4 = arith.constant 0 : index
    %c0_5 = arith.constant 0 : index
    %19 = vector.load %arg3[%c0_4, %c0_5] : memref<8x128xf32, #tpu.memory_space<vmem>>, vector<8x128xf32>
    %cst_6 = arith.constant 2.000000e-01 : f32
    %20 = vector.broadcast %cst_6 : f32 to vector<8x128xf32>
    %21 = arith.mulf %19, %20 : vector<8x128xf32>
    %cst_7 = arith.constant dense<0xFF800000> : vector<8xf32>
    %22 = vector.multi_reduction <maximumf>, %21, %cst_7 [1] : vector<8x128xf32> to vector<8xf32>
    %23 = vector.shape_cast %22 : vector<8xf32> to vector<8x1xf32>
    %24 = vector.broadcast %23 : vector<8x1xf32> to vector<8x128xf32>
    %25 = arith.subf %21, %24 : vector<8x128xf32>
    %26 = math.exp %25 : vector<8x128xf32>
    %cst_8 = arith.constant dense<0.000000e+00> : vector<8xf32>
    %27 = vector.multi_reduction <add>, %26, %cst_8 [1] : vector<8x128xf32> to vector<8xf32>
    %28 = vector.shape_cast %27 : vector<8xf32> to vector<8x1xf32>
    %29 = math.log %28 : vector<8x1xf32>
    %30 = vector.broadcast %29 : vector<8x1xf32> to vector<8x128xf32>
    %31 = arith.subf %25, %30 : vector<8x128xf32>
    %32 = tpu.reciprocal %28 : vector<8x1xf32> -> vector<8x1xf32>
    %33 = vector.broadcast %32 : vector<8x1xf32> to vector<8x128xf32>
    %34 = arith.mulf %26, %33 : vector<8x128xf32>
    %c0_9 = arith.constant 0 : index
    %c0_10 = arith.constant 0 : index
    %35 = vector.load %arg4[%c0_9, %c0_10] : memref<8x128xf32, #tpu.memory_space<vmem>>, vector<8x128xf32>
    %cst_11 = arith.constant 2.000000e-01 : f32
    %36 = vector.broadcast %cst_11 : f32 to vector<8x128xf32>
    %37 = arith.mulf %35, %36 : vector<8x128xf32>
    %cst_12 = arith.constant dense<0xFF800000> : vector<8xf32>
    %38 = vector.multi_reduction <maximumf>, %37, %cst_12 [1] : vector<8x128xf32> to vector<8xf32>
    %39 = vector.shape_cast %38 : vector<8xf32> to vector<8x1xf32>
    %40 = vector.broadcast %39 : vector<8x1xf32> to vector<8x128xf32>
    %41 = arith.subf %37, %40 : vector<8x128xf32>
    %42 = math.exp %41 : vector<8x128xf32>
    %cst_13 = arith.constant dense<0.000000e+00> : vector<8xf32>
    %43 = vector.multi_reduction <add>, %42, %cst_13 [1] : vector<8x128xf32> to vector<8xf32>
    %44 = vector.shape_cast %43 : vector<8xf32> to vector<8x1xf32>
    %45 = math.log %44 : vector<8x1xf32>
    %46 = vector.broadcast %45 : vector<8x1xf32> to vector<8x128xf32>
    %47 = arith.subf %41, %46 : vector<8x128xf32>
    %48 = tpu.reciprocal %44 : vector<8x1xf32> -> vector<8x1xf32>
    %49 = vector.broadcast %48 : vector<8x1xf32> to vector<8x128xf32>
    %50 = arith.mulf %42, %49 : vector<8x128xf32>
    %51 = tpu.iota {dimensions = array<i32: 0>} : vector<3x3xi32>
    %52 = tpu.iota {dimensions = array<i32: 1>} : vector<3x3xi32>
    %cst_14 = arith.constant 0.000000e+00 : f32
    %53 = vector.broadcast %cst_14 : f32 to vector<3x3xf32>
    %54 = arith.mulf %15, %18 : vector<8x128xf32>
    %cst_15 = arith.constant dense<0.000000e+00> : vector<8xf32>
    %55 = vector.multi_reduction <add>, %54, %cst_15 [1] : vector<8x128xf32> to vector<8xf32>
    %56 = vector.shape_cast %55 : vector<8xf32> to vector<8x1xf32>
    %cst_16 = arith.constant dense<0.000000e+00> : vector<1xf32>
    %57 = vector.multi_reduction <add>, %56, %cst_16 [0] : vector<8x1xf32> to vector<1xf32>
    %58 = vector.shape_cast %57 : vector<1xf32> to vector<1x1xf32>
    %c0_i32_17 = arith.constant 0 : i32
    %59 = vector.broadcast %c0_i32_17 : i32 to vector<3x3xi32>
    %60 = arith.cmpi eq, %51, %59 : vector<3x3xi32>
    %c0_i32_18 = arith.constant 0 : i32
    %61 = vector.broadcast %c0_i32_18 : i32 to vector<3x3xi32>
    %62 = arith.cmpi eq, %52, %61 : vector<3x3xi32>
    %63 = arith.andi %60, %62 : vector<3x3xi1>
    %64 = arith.extui %63 : vector<3x3xi1> to vector<3x3xi32>
    %65 = arith.sitofp %64 : vector<3x3xi32> to vector<3x3xf32>
    %66 = vector.broadcast %58 : vector<1x1xf32> to vector<3x3xf32>
    %67 = arith.mulf %65, %66 : vector<3x3xf32>
    %68 = arith.addf %53, %67 : vector<3x3xf32>
    %69 = arith.mulf %15, %34 : vector<8x128xf32>
    %cst_19 = arith.constant dense<0.000000e+00> : vector<8xf32>
    %70 = vector.multi_reduction <add>, %69, %cst_19 [1] : vector<8x128xf32> to vector<8xf32>
    %71 = vector.shape_cast %70 : vector<8xf32> to vector<8x1xf32>
    %cst_20 = arith.constant dense<0.000000e+00> : vector<1xf32>
    %72 = vector.multi_reduction <add>, %71, %cst_20 [0] : vector<8x1xf32> to vector<1xf32>
    %73 = vector.shape_cast %72 : vector<1xf32> to vector<1x1xf32>
    %c0_i32_21 = arith.constant 0 : i32
    %74 = vector.broadcast %c0_i32_21 : i32 to vector<3x3xi32>
    %75 = arith.cmpi eq, %51, %74 : vector<3x3xi32>
    %c1_i32 = arith.constant 1 : i32
    %76 = vector.broadcast %c1_i32 : i32 to vector<3x3xi32>
    %77 = arith.cmpi eq, %52, %76 : vector<3x3xi32>
    %78 = arith.andi %75, %77 : vector<3x3xi1>
    %79 = arith.extui %78 : vector<3x3xi1> to vector<3x3xi32>
    %80 = arith.sitofp %79 : vector<3x3xi32> to vector<3x3xf32>
    %81 = vector.broadcast %73 : vector<1x1xf32> to vector<3x3xf32>
    %82 = arith.mulf %80, %81 : vector<3x3xf32>
    %83 = arith.addf %68, %82 : vector<3x3xf32>
    %84 = arith.mulf %15, %50 : vector<8x128xf32>
    %cst_22 = arith.constant dense<0.000000e+00> : vector<8xf32>
    %85 = vector.multi_reduction <add>, %84, %cst_22 [1] : vector<8x128xf32> to vector<8xf32>
    %86 = vector.shape_cast %85 : vector<8xf32> to vector<8x1xf32>
    %cst_23 = arith.constant dense<0.000000e+00> : vector<1xf32>
    %87 = vector.multi_reduction <add>, %86, %cst_23 [0] : vector<8x1xf32> to vector<1xf32>
    %88 = vector.shape_cast %87 : vector<1xf32> to vector<1x1xf32>
    %c0_i32_24 = arith.constant 0 : i32
    %89 = vector.broadcast %c0_i32_24 : i32 to vector<3x3xi32>
    %90 = arith.cmpi eq, %51, %89 : vector<3x3xi32>
    %c2_i32 = arith.constant 2 : i32
    %91 = vector.broadcast %c2_i32 : i32 to vector<3x3xi32>
    %92 = arith.cmpi eq, %52, %91 : vector<3x3xi32>
    %93 = arith.andi %90, %92 : vector<3x3xi1>
    %94 = arith.extui %93 : vector<3x3xi1> to vector<3x3xi32>
    %95 = arith.sitofp %94 : vector<3x3xi32> to vector<3x3xf32>
    %96 = vector.broadcast %88 : vector<1x1xf32> to vector<3x3xf32>
    %97 = arith.mulf %95, %96 : vector<3x3xf32>
    %98 = arith.addf %83, %97 : vector<3x3xf32>
    %99 = arith.mulf %31, %18 : vector<8x128xf32>
    %cst_25 = arith.constant dense<0.000000e+00> : vector<8xf32>
    %100 = vector.multi_reduction <add>, %99, %cst_25 [1] : vector<8x128xf32> to vector<8xf32>
    %101 = vector.shape_cast %100 : vector<8xf32> to vector<8x1xf32>
    %cst_26 = arith.constant dense<0.000000e+00> : vector<1xf32>
    %102 = vector.multi_reduction <add>, %101, %cst_26 [0] : vector<8x1xf32> to vector<1xf32>
    %103 = vector.shape_cast %102 : vector<1xf32> to vector<1x1xf32>
    %c1_i32_27 = arith.constant 1 : i32
    %104 = vector.broadcast %c1_i32_27 : i32 to vector<3x3xi32>
    %105 = arith.cmpi eq, %51, %104 : vector<3x3xi32>
    %c0_i32_28 = arith.constant 0 : i32
    %106 = vector.broadcast %c0_i32_28 : i32 to vector<3x3xi32>
    %107 = arith.cmpi eq, %52, %106 : vector<3x3xi32>
    %108 = arith.andi %105, %107 : vector<3x3xi1>
    %109 = arith.extui %108 : vector<3x3xi1> to vector<3x3xi32>
    %110 = arith.sitofp %109 : vector<3x3xi32> to vector<3x3xf32>
    %111 = vector.broadcast %103 : vector<1x1xf32> to vector<3x3xf32>
    %112 = arith.mulf %110, %111 : vector<3x3xf32>
    %113 = arith.addf %98, %112 : vector<3x3xf32>
    %114 = arith.mulf %31, %34 : vector<8x128xf32>
    %cst_29 = arith.constant dense<0.000000e+00> : vector<8xf32>
    %115 = vector.multi_reduction <add>, %114, %cst_29 [1] : vector<8x128xf32> to vector<8xf32>
    %116 = vector.shape_cast %115 : vector<8xf32> to vector<8x1xf32>
    %cst_30 = arith.constant dense<0.000000e+00> : vector<1xf32>
    %117 = vector.multi_reduction <add>, %116, %cst_30 [0] : vector<8x1xf32> to vector<1xf32>
    %118 = vector.shape_cast %117 : vector<1xf32> to vector<1x1xf32>
    %c1_i32_31 = arith.constant 1 : i32
    %119 = vector.broadcast %c1_i32_31 : i32 to vector<3x3xi32>
    %120 = arith.cmpi eq, %51, %119 : vector<3x3xi32>
    %c1_i32_32 = arith.constant 1 : i32
    %121 = vector.broadcast %c1_i32_32 : i32 to vector<3x3xi32>
    %122 = arith.cmpi eq, %52, %121 : vector<3x3xi32>
    %123 = arith.andi %120, %122 : vector<3x3xi1>
    %124 = arith.extui %123 : vector<3x3xi1> to vector<3x3xi32>
    %125 = arith.sitofp %124 : vector<3x3xi32> to vector<3x3xf32>
    %126 = vector.broadcast %118 : vector<1x1xf32> to vector<3x3xf32>
    %127 = arith.mulf %125, %126 : vector<3x3xf32>
    %128 = arith.addf %113, %127 : vector<3x3xf32>
    %129 = arith.mulf %31, %50 : vector<8x128xf32>
    %cst_33 = arith.constant dense<0.000000e+00> : vector<8xf32>
    %130 = vector.multi_reduction <add>, %129, %cst_33 [1] : vector<8x128xf32> to vector<8xf32>
    %131 = vector.shape_cast %130 : vector<8xf32> to vector<8x1xf32>
    %cst_34 = arith.constant dense<0.000000e+00> : vector<1xf32>
    %132 = vector.multi_reduction <add>, %131, %cst_34 [0] : vector<8x1xf32> to vector<1xf32>
    %133 = vector.shape_cast %132 : vector<1xf32> to vector<1x1xf32>
    %c1_i32_35 = arith.constant 1 : i32
    %134 = vector.broadcast %c1_i32_35 : i32 to vector<3x3xi32>
    %135 = arith.cmpi eq, %51, %134 : vector<3x3xi32>
    %c2_i32_36 = arith.constant 2 : i32
    %136 = vector.broadcast %c2_i32_36 : i32 to vector<3x3xi32>
    %137 = arith.cmpi eq, %52, %136 : vector<3x3xi32>
    %138 = arith.andi %135, %137 : vector<3x3xi1>
    %139 = arith.extui %138 : vector<3x3xi1> to vector<3x3xi32>
    %140 = arith.sitofp %139 : vector<3x3xi32> to vector<3x3xf32>
    %141 = vector.broadcast %133 : vector<1x1xf32> to vector<3x3xf32>
    %142 = arith.mulf %140, %141 : vector<3x3xf32>
    %143 = arith.addf %128, %142 : vector<3x3xf32>
    %144 = arith.mulf %47, %18 : vector<8x128xf32>
    %cst_37 = arith.constant dense<0.000000e+00> : vector<8xf32>
    %145 = vector.multi_reduction <add>, %144, %cst_37 [1] : vector<8x128xf32> to vector<8xf32>
    %146 = vector.shape_cast %145 : vector<8xf32> to vector<8x1xf32>
    %cst_38 = arith.constant dense<0.000000e+00> : vector<1xf32>
    %147 = vector.multi_reduction <add>, %146, %cst_38 [0] : vector<8x1xf32> to vector<1xf32>
    %148 = vector.shape_cast %147 : vector<1xf32> to vector<1x1xf32>
    %c2_i32_39 = arith.constant 2 : i32
    %149 = vector.broadcast %c2_i32_39 : i32 to vector<3x3xi32>
    %150 = arith.cmpi eq, %51, %149 : vector<3x3xi32>
    %c0_i32_40 = arith.constant 0 : i32
    %151 = vector.broadcast %c0_i32_40 : i32 to vector<3x3xi32>
    %152 = arith.cmpi eq, %52, %151 : vector<3x3xi32>
    %153 = arith.andi %150, %152 : vector<3x3xi1>
    %154 = arith.extui %153 : vector<3x3xi1> to vector<3x3xi32>
    %155 = arith.sitofp %154 : vector<3x3xi32> to vector<3x3xf32>
    %156 = vector.broadcast %148 : vector<1x1xf32> to vector<3x3xf32>
    %157 = arith.mulf %155, %156 : vector<3x3xf32>
    %158 = arith.addf %143, %157 : vector<3x3xf32>
    %159 = arith.mulf %47, %34 : vector<8x128xf32>
    %cst_41 = arith.constant dense<0.000000e+00> : vector<8xf32>
    %160 = vector.multi_reduction <add>, %159, %cst_41 [1] : vector<8x128xf32> to vector<8xf32>
    %161 = vector.shape_cast %160 : vector<8xf32> to vector<8x1xf32>
    %cst_42 = arith.constant dense<0.000000e+00> : vector<1xf32>
    %162 = vector.multi_reduction <add>, %161, %cst_42 [0] : vector<8x1xf32> to vector<1xf32>
    %163 = vector.shape_cast %162 : vector<1xf32> to vector<1x1xf32>
    %c2_i32_43 = arith.constant 2 : i32
    %164 = vector.broadcast %c2_i32_43 : i32 to vector<3x3xi32>
    %165 = arith.cmpi eq, %51, %164 : vector<3x3xi32>
    %c1_i32_44 = arith.constant 1 : i32
    %166 = vector.broadcast %c1_i32_44 : i32 to vector<3x3xi32>
    %167 = arith.cmpi eq, %52, %166 : vector<3x3xi32>
    %168 = arith.andi %165, %167 : vector<3x3xi1>
    %169 = arith.extui %168 : vector<3x3xi1> to vector<3x3xi32>
    %170 = arith.sitofp %169 : vector<3x3xi32> to vector<3x3xf32>
    %171 = vector.broadcast %163 : vector<1x1xf32> to vector<3x3xf32>
    %172 = arith.mulf %170, %171 : vector<3x3xf32>
    %173 = arith.addf %158, %172 : vector<3x3xf32>
    %174 = arith.mulf %47, %50 : vector<8x128xf32>
    %cst_45 = arith.constant dense<0.000000e+00> : vector<8xf32>
    %175 = vector.multi_reduction <add>, %174, %cst_45 [1] : vector<8x128xf32> to vector<8xf32>
    %176 = vector.shape_cast %175 : vector<8xf32> to vector<8x1xf32>
    %cst_46 = arith.constant dense<0.000000e+00> : vector<1xf32>
    %177 = vector.multi_reduction <add>, %176, %cst_46 [0] : vector<8x1xf32> to vector<1xf32>
    %178 = vector.shape_cast %177 : vector<1xf32> to vector<1x1xf32>
    %c2_i32_47 = arith.constant 2 : i32
    %179 = vector.broadcast %c2_i32_47 : i32 to vector<3x3xi32>
    %180 = arith.cmpi eq, %51, %179 : vector<3x3xi32>
    %c2_i32_48 = arith.constant 2 : i32
    %181 = vector.broadcast %c2_i32_48 : i32 to vector<3x3xi32>
    %182 = arith.cmpi eq, %52, %181 : vector<3x3xi32>
    %183 = arith.andi %180, %182 : vector<3x3xi1>
    %184 = arith.extui %183 : vector<3x3xi1> to vector<3x3xi32>
    %185 = arith.sitofp %184 : vector<3x3xi32> to vector<3x3xf32>
    %186 = vector.broadcast %178 : vector<1x1xf32> to vector<3x3xf32>
    %187 = arith.mulf %185, %186 : vector<3x3xf32>
    %188 = arith.addf %173, %187 : vector<3x3xf32>
    %c0_49 = arith.constant 0 : index
    %c0_50 = arith.constant 0 : index
    %c0_51 = arith.constant 0 : index
    %189 = vector.load %arg5[%c0_49, %c0_50, %c0_51] : memref<1x3x3xf32, #tpu.memory_space<vmem>>, vector<1x3x3xf32>
    %190 = vector.shape_cast %189 : vector<1x3x3xf32> to vector<3x3xf32>
    %191 = arith.addf %190, %188 : vector<3x3xf32>
    %c0_52 = arith.constant 0 : index
    %c0_53 = arith.constant 0 : index
    %c0_54 = arith.constant 0 : index
    %192 = vector.load %arg5[%c0_52, %c0_53, %c0_54] : memref<1x3x3xf32, #tpu.memory_space<vmem>>, vector<1x3x3xf32>
    %193 = vector.shape_cast %192 : vector<1x3x3xf32> to vector<3x3xf32>
    %194 = vector.shape_cast %191 : vector<3x3xf32> to vector<1x3x3xf32>
    tpu.vector_store %arg5[%c0_52, %c0_53, %c0_54], %194 {strides = array<i32>} : memref<1x3x3xf32, #tpu.memory_space<vmem>>, vector<1x3x3xf32>,
    return
  }
  func.func @transform_0(%arg0: i32, %arg1: i32) -> (i32, i32) {
    %c2_i32 = arith.constant 2 : i32
    %0 = arith.muli %arg0, %c2_i32 : i32
    %1 = arith.addi %0, %arg1 : i32
    %c0_i32 = arith.constant 0 : i32
    %c0_i32_0 = arith.constant 0 : i32
    return %1, %c0_i32 : i32, i32
  }
  func.func @transform_1(%arg0: i32, %arg1: i32) -> (i32, i32) {
    %c2_i32 = arith.constant 2 : i32
    %0 = arith.muli %arg0, %c2_i32 : i32
    %1 = arith.addi %0, %arg1 : i32
    %c0_i32 = arith.constant 0 : i32
    %c0_i32_0 = arith.constant 0 : i32
    return %1, %c0_i32 : i32, i32
  }
  func.func @transform_2(%arg0: i32, %arg1: i32) -> (i32, i32) {
    %c2_i32 = arith.constant 2 : i32
    %0 = arith.muli %arg0, %c2_i32 : i32
    %1 = arith.addi %0, %arg1 : i32
    %c0_i32 = arith.constant 0 : i32
    %c0_i32_0 = arith.constant 0 : i32
    return %1, %c0_i32 : i32, i32
  }
  func.func @transform_3(%arg0: i32, %arg1: i32) -> (i32, i32, i32) {
    %c0_i32 = arith.constant 0 : i32
    %c0_i32_0 = arith.constant 0 : i32
    %c0_i32_1 = arith.constant 0 : i32
    return %arg0, %c0_i32, %c0_i32_0 : i32, i32, i32
  }
}

</mosaic_0001>

<bundles_post_ra>
// kernel: tpu_custom_call.1
= control target key start
LH: loop header
LB: loop body
LE: loop exit
PB: predicated region body
PF: predicated region fallthrough
CT: control target
= control target key end

     0   :  { %s1208_s0 = inlined_call_operand.hbm [shape: f32[32,128], index: 0, kind: input, shape index: {}]   ;;  %s1209_s1 = inlined_call_operand.hbm [shape: f32[32,128], index: 1, kind: input, shape index: {}]   ;;  %s1210_s2 = inlined_call_operand.hbm [shape: f32[32,128], index: 2, kind: input, shape index: {}]   ;;  %s1211_s3 = inlined_call_operand.vmem [shape: f32[2,3,3], index: 3, kind: output, shape index: {}]  }
   0x1   :  { %1217 = sst [smem:[#allocation10_spill]] %s1209_s1 }
   0x2   :  { %8 = vsyncpa [#allocation3], 0 }
   0x3   :  { %10 = vsyncpa [#allocation3 + $0x1], 0 }
   0x4   :  { %11 = vsyncpa [#allocation5], 0 }
   0x5   :  { %13 = vsyncpa [#allocation5 + $0x1], 0  ;;  %s930_s12 = smov 0   ;;  %s932_s13 = smov 0  }
   0x6   :  { %s934_s14 = smov 0   ;;  %s936_s15 = smov 0  }
   0x7   :  { %s938_s16 = smov 0   ;;  %s940_s17 = smov 0  }
   0x8   :  { %s942_s18 = smov 0   ;;  %s944_s19 = smov 0  }
   0x9 LB: > { %s1213_s20 = sadd.s32 4294967295, %s903_s19   ;;  %s28_s21 = sadd.s32 1, %s895_s17  ;;  %s903_s19 = sphi %s944_s19, %s19_s19   ;;  %s899_s18 = sphi %s942_s18, %s1237_s18   ;;  %s895_s17 = sphi %s940_s17, %s1236_s17   ;;  %s891_s16 = sphi %s938_s16, %s1235_s16   ;;  %s887_s15 = sphi %s936_s15, %s1234_s15   ;;  %s883_s14 = sphi %s934_s14, %s1233_s14   ;;  %s879_s13 = sphi %s932_s13, %s1232_s13   ;;  %s875_s12 = sphi %s930_s12, %s1231_s12  }
   0xa   : > { %p29_p0 = scmp.ge.s32.totalorder %s28_s21, 2  ;;  %s31_s22 = sadd.s32 1, %s899_s18 }
   0xb   : > { %s608_s23 = sshll.u32 %s899_s18, 1  ;;  %s42_s24 = sadd.s32 1, %s883_s14 }
   0xc   : > { %s1239_s21 = smov (%p29_p0, %s28_s21), 0  ;;  %s1241_s22 = smov (!%p29_p0, %s31_s22), %s899_s18 }
   0xd   : > { %s36_s25 = sadd.s32 %s895_s17, %s608_s23  ;;  %p49_p1 = scmp.ne.s32.totalorder %s883_s14, %s879_s13 }
   0xe   : > { %p33_p2 = scmp.ge.s32.totalorder %s1241_s22, 2  ;;  %p50_p3 = scmp.eq.s32.totalorder %s903_s19, 0 }
   0xf   : > { %p55_p4 = scmp.ne.s32.totalorder %s879_s13, %s875_s12  ;;  %p56_p5 = scmp.eq.s32.totalorder %s1213_s20, 0 }
  0x10   : > { %s1243_s22 = smov (%p33_p2, %s1241_s22), 0  ;;  %p51_p6 = por %p50_p3, %p49_p1 }
  0x11   : > { %1218 = sst [smem:[#allocation9_spill]] %s1243_s22  ;;  %p985_p7 = por %p56_p5, %p55_p4 }
  0x12   : > { %s609_s27 = sshll.u32 %s1243_s22, 1  ;;  %p658_p8 = scmp.lt.s32.totalorder %s903_s19, 4 }
  0x13   : > { %s1219_s26 = scalar_select %p985_p7, 1, 0 }
  0x14   : > { %s38_s28 = sadd.s32 %s609_s27, %s1239_s21  ;;  %s165_s30 = sand.u32 1, %s883_s14  }
  0x15   : > { %s39_s29 = ssub.s32 %s36_s25, %s38_s28  ;;  %s995_s4 = sshll.u32 %s165_s30, 3 }
  0x16   : > { %p40_p9 = scmp.eq.s32.totalorder %s39_s29, 0  ;;  %s997_s5 = sshll.u32 %s36_s25, 7 }
  0x17   : > { %p999_p10 = pnand %p658_p8, %p51_p6  ;;  %s185_s8 = sand.u32 1, %s903_s19  }
  0x18   : > { %s1004_s7 = scalar_select %p40_p9, %s883_s14, %s42_s24  }
  0x19   : > { %s1220_s6 = scalar_select %p999_p10, 1, 0 }
  0x1a   : > { %s1221_s1 = sld [smem:[#allocation10_spill]]  ;;  %s189_s12 = scalar_lea.vmem [#allocation4], %s995_s4 }
  0x1b   : > { %s198_s23 = sshll.u32 %s189_s12, 4  ;;  %s1017_s25 = scalar_lea.sflag [#allocation5], %s185_s8  ;;  %s1014_s23 = int_to_ptr.vmem [resolvable:$true] %s198_s23 }
  0x1c   : > { %p1023_p13 = pneg %p999_p10 }
  0x20   : > { %s1011_s11 = scalar_lea.hbm %s1221_s1, %s997_s5  ;;  %s748_s9 = scalar_lea.hbm %s1221_s1, 512 }
  0x21   : > { %s743_s27 = scalar_lea.hbm %s1011_s11, 128  ;;  %p749_p2 = scmp.lt.u32.totalorder %s1011_s11, %s1221_s1 }
  0x22   : > { %p744_p12 = scmp.ne.s32.totalorder %s1011_s11, %s743_s27  ;;  %p750_p3 = scmp.lt.u32.totalorder %s748_s9, %s743_s27 }
  0x23   : > { %p752_p5 = scmp.lt.u32.totalorder %s743_s27, %s1011_s11 }
  0x24   : > { %p746_p0 = pnand %p1023_p13, %p744_p12  ;;  %p751_p4 = por %p750_p3, %p749_p2 }
  0x26   : > { %p747_p1 = pneg %p746_p0  ;;  %p753_p6 = por %p752_p5, %p751_p4 }
  0x28   : > { %p754_p8 = pnand %p753_p6, %p747_p1 }
  0x2a   : > { %757 = shalt.err (!%p754_p8)
}
  0x2b   : > { %s758_s8 = scalar_lea.vmem %s1014_s23, 128  ;;  %s905_s28 = smov [#allocation4]  }
  0x2c   : > { %p759_p9 = scmp.ne.s32.totalorder %s1014_s23, %s758_s8  ;;  %s763_s29 = sshll.u32 %s905_s28, 4  ;;  %s764_s29 = int_to_ptr.vmem [resolvable:$false] %s763_s29 }
  0x2d   : > { %s765_s10 = scalar_lea.vmem %s764_s29, 256  ;;  %p766_p11 = scmp.lt.s32.totalorder %s1014_s23, %s764_s29 }
  0x2e   : > { %p761_p12 = pnand %p759_p9, %p1023_p13  ;;  %p767_p7 = scmp.lt.s32.totalorder %s765_s10, %s758_s8 }
  0x30   : > { %p762_p0 = pneg %p761_p12  ;;  %p768_p2 = por %p767_p7, %p766_p11 }
  0x32   : > { %p769_p3 = pnand %p768_p2, %p762_p0 }
  0x34   : > { %772 = shalt.err (!%p769_p3)
}
  0x35   : > { %654 = dma.hbm_to_vmem [thread:$0]  (!%p999_p10), %s1011_s11, 128, %s1014_s23, %s1017_s25  }
  0x36   : > { %p223_p1 = scmp.lt.s32.totalorder %s903_s19, 5  ;;  %p1223_p4 = scmp.ge.s32.totalorder %s903_s19, 1 }
  0x37   : > { %s1058_s8 = scalar_lea.hbm %s1208_s0, %s997_s5  ;;  %s169_s28 = scalar_lea.vmem [#allocation2], %s995_s4 }
  0x38   : > { %p1050_p5 = pnand %p1223_p4, %p223_p1  ;;  %s178_s29 = sshll.u32 %s169_s28, 4  ;;  %s179_s29 = int_to_ptr.vmem [resolvable:$true] %s178_s29 }
  0x39   : > { %s166_s11 = scalar_lea.sflag [#allocation3], %s165_s30  ;;  %s773_s23 = scalar_lea.hbm %s1058_s8, 128 }
  0x3a   : > { %s1224_s27 = scalar_select %p1050_p5, 1, 0 }
  0x3b   : > { %p774_p7 = scmp.ne.s32.totalorder %s1058_s8, %s773_s23  ;;  %s778_s9 = scalar_lea.hbm %s1208_s0, 512 }
  0x3c   : > { %p779_p8 = scmp.lt.u32.totalorder %s1058_s8, %s1208_s0  ;;  %p780_p9 = scmp.lt.u32.totalorder %s778_s9, %s773_s23 }
  0x3d   : > { %p776_p11 = pnand %p774_p7, %p1023_p13  ;;  %p782_p0 = scmp.lt.u32.totalorder %s773_s23, %s1058_s8 }
  0x3e   : > { %p781_p12 = por %p780_p9, %p779_p8 }
  0x3f   : > { %p777_p6 = pneg %p776_p11 }
  0x40   : > { %p783_p2 = por %p782_p0, %p781_p12 }
  0x42   : > { %p784_p3 = pnand %p783_p2, %p777_p6 }
  0x44   : > { %787 = shalt.err (!%p784_p3)
}
  0x45   : > { %s788_s30 = scalar_lea.vmem %s179_s29, 128  ;;  %s906_s28 = smov [#allocation2]  }
  0x46   : > { %p789_p1 = scmp.ne.s32.totalorder %s179_s29, %s788_s30  ;;  %s793_s22 = sshll.u32 %s906_s28, 4  ;;  %s794_s22 = int_to_ptr.vmem [resolvable:$false] %s793_s22 }
  0x47   : > { %s795_s20 = scalar_lea.vmem %s794_s22, 256  ;;  %p796_p11 = scmp.lt.s32.totalorder %s179_s29, %s794_s22 }
  0x48   : > { %p791_p4 = pnand %p789_p1, %p1023_p13  ;;  %p797_p5 = scmp.lt.s32.totalorder %s795_s20, %s788_s30 }
  0x4a   : > { %p792_p7 = pneg %p791_p4  ;;  %p798_p10 = por %p797_p5, %p796_p11 }
  0x4c   : > { %p799_p8 = pnand %p798_p10, %p792_p7 }
  0x4e   : > { %802 = shalt.err (!%p799_p8)
}
  0x4f   : > { %p1225_p9 = scmp.ne.s32.totalorder %s1220_s6, 0  ;;  %s1084_s10 = scalar_lea.hbm %s1210_s2, %s997_s5 }
  0x50   : > { %s209_s22 = scalar_lea.vmem [#allocation6], %s995_s4  ;;  %s803_s12 = scalar_lea.hbm %s1084_s10, 128 }
  0x51   : > { %651 = dma.hbm_to_vmem [thread:$0]  (!%p1225_p9), %s1058_s8, 128, %s179_s29, %s166_s11  }
  0x52   : > { %s218_s9 = sshll.u32 %s209_s22, 4  ;;  %p804_p10 = scmp.ne.s32.totalorder %s1084_s10, %s803_s12  ;;  %s219_s9 = int_to_ptr.vmem [resolvable:$true] %s218_s9 }
  0x53   : > { %s808_s8 = scalar_lea.hbm %s1210_s2, 512  ;;  %p809_p12 = scmp.lt.u32.totalorder %s1084_s10, %s1210_s2 }
  0x54   : > { %p806_p5 = pnand %p804_p10, %p1023_p13  ;;  %p810_p0 = scmp.lt.u32.totalorder %s808_s8, %s803_s12 }
  0x55   : > { %p812_p3 = scmp.lt.u32.totalorder %s803_s12, %s1084_s10 }
  0x56   : > { %p807_p6 = pneg %p806_p5  ;;  %p811_p2 = por %p810_p0, %p809_p12 }
  0x58   : > { %p813_p1 = por %p812_p3, %p811_p2 }
  0x5a   : > { %p814_p4 = pnand %p813_p1, %p807_p6 }
  0x5c   : > { %817 = shalt.err (!%p814_p4)
}
  0x5d   : > { %s818_s4 = scalar_lea.vmem %s219_s9, 128  ;;  %s907_s5 = smov [#allocation6]  }
  0x5e   : > { %p819_p7 = scmp.ne.s32.totalorder %s219_s9, %s818_s4  ;;  %s823_s20 = sshll.u32 %s907_s5, 4  ;;  %s824_s20 = int_to_ptr.vmem [resolvable:$false] %s823_s20 }
  0x5f   : > { %s825_s1 = scalar_lea.vmem %s824_s20, 256  ;;  %p826_p10 = scmp.lt.s32.totalorder %s219_s9, %s824_s20 }
  0x60   : > { %p821_p11 = pnand %p819_p7, %p1023_p13  ;;  %p827_p5 = scmp.lt.s32.totalorder %s825_s1, %s818_s4 }
  0x62   : > { %p822_p8 = pneg %p821_p11  ;;  %p828_p9 = por %p827_p5, %p826_p10 }
  0x64   : > { %p829_p0 = pnand %p828_p9, %p822_p8 }
  0x66   : > { %832 = shalt.err (!%p829_p0)
}
  0x67   : > { %p1226_p12 = scmp.ne.s32.totalorder %s1220_s6, 0  ;;  %p1227_p6 = scmp.ne.s32.totalorder %s1224_s27, 0 }
  0x68   : > { %s229_s24 = sand.u32 (!%p1227_p6), 1, %s879_s13   ;;  %p1228_p13 = scmp.ne.s32.totalorder (!%p1227_p6), %s1219_s26, 0 }
  0x69   : > { %657 = dma.hbm_to_vmem [thread:$0]  (!%p1226_p12), %s1084_s10, 128, %s219_s9, %s1017_s25  }
  0x6a   : > { %227 = sbr.rel (%p1227_p6) target bundleno = 627 (0x273), region = 32  ;;  %s626_s23 = sshll.u32 (!%p1227_p6), %s229_s24, 3 }
  0x6b   : > { %s230_s22 = scalar_lea.sflag (!%p1227_p6), [#allocation3], %s229_s24  ;;  %s233_s12 = scalar_lea.vmem (!%p1227_p6), [#allocation2], %s626_s23 }
  0x71   : > { %866 = dma.done.wait (%p1228_p13), %s230_s22, 128  }
  0x72   : > { %868 = vsyncadd (%p1228_p13), %s230_s22, 4294967168  ;;  %s1229_s30 = sadd.s32 4294967295, %s903_s19   ;;  %s242_s25 = scalar_lea.vmem [#allocation4], %s626_s23 }
  0x73   : > { %s238_s6 = sand.u32 1, %s1229_s30  }
  0x74   : > { %s239_s28 = scalar_lea.sflag [#allocation5], %s238_s6 }
  0x75   : > { %870 = dma.done.wait (%p1228_p13), %s239_s28, 256  }
  0x76   : > { %872 = vsyncadd (%p1228_p13), %s239_s28, 4294967040  ;;  %p289_p9 = scmp.lt.s32.totalorder %s891_s16, 1  ;;  %s251_s29 = scalar_lea.vmem [#allocation6], %s626_s23 }
  0x77   : > { %p630_p2 = scmp.ne.s32.totalorder %s887_s15, 0 }
  0x78   : > { %s1245_s16 = smov (!%p289_p9, %s891_s16), 1  ;;  %vm297_vm0 = vcmask (!%p630_p2), 18432   ;;  %v908_v0 = vmov (!%p630_p2), 0.0  }
  0x79   : > { %s629_s27 = sshll.u32 %s1245_s16, 2  ;;  %296 = sbr.rel (%p630_p2) target bundleno = 128 (0x80), region = 48 }
  0x7a   : > { %s1123_s8 = scalar_lea.vmem %s1211_s3, %s629_s27 }
  0x7b   : > { %298 = vst.msk [vmem:[%s1123_s8] sm:$0x7] (!%p630_p2), %vm297_vm0, %v908_v0 }
  0x80 PF: > { %v299_v1 = vld [vmem:[%s233_s12] sm:$0xff]  ;;  %v313_v3 = vld [vmem:[%s242_s25] sm:$0xff]  ;;  %v341_v46 = vlaneseq  ;;  %vm479_vm0 = vcmask 18432  }
  0x81   : > { %v327_v2 = vld [vmem:[%s251_s29] sm:$0xff]  ;;  %v300_v4 = vmul.f32 0.2, %v299_v1  ;;  %v314_v6 = vmul.f32 0.2, %v313_v3  ;;  %v909_v3 = vmov 0.0  }
  0x82   : > { %v328_v5 = vmul.f32 0.2, %v327_v2  ;;  %v1127_v48 = vshrl.u32 %v341_v46, 7  ;;  %v1129_v49 = vand.u32 127, %v341_v46 }
  0x83   : > { %301 = vmax.xlane.f32.xlu0 %v300_v4 }
  0x84   : > { %329 = vmax.xlane.f32.xlu1 %v328_v5  ;;  %vm354_vm1 = vcmp.eq.s32.totalorder %v1127_v48, 0  ;;  %vm355_vm2 = vcmp.eq.s32.totalorder %v1129_v49, 0  ;;  %vm370_vm3 = vcmp.eq.s32.totalorder %v1129_v49, 1  ;;  %vm385_vm4 = vcmp.eq.s32.totalorder %v1129_v49, 2 }
  0x85   : > { %vm356_vm5 = vmand %vm354_vm1, %vm355_vm2  ;;  %vm400_vm8 = vcmp.eq.s32.totalorder %v1127_v48, 1  ;;  %vm443_vm10 = vcmp.eq.s32.totalorder %v1127_v48, 2  ;;  %v477_v48 = vld [vmem:[%s1123_s8] sm:$0x7] }
  0x86   : > { %vm371_vm6 = vmand %vm354_vm1, %vm370_vm3 }
  0x87   : > { %315 = vmax.xlane.f32.xlu0 %v314_v6  ;;  %vm386_vm7 = vmand %vm354_vm1, %vm385_vm4 }
  0x88   : > { %vm415_vm9 = vmand %vm400_vm8, %vm370_vm3 }
  0x89   : > { %vm401_vm11 = vmand %vm400_vm8, %vm355_vm2 }
  0x8a   : > { %vm429_vm12 = vmand %vm400_vm8, %vm385_vm4 }
  0x8b   : > { %vm444_vm13 = vmand %vm443_vm10, %vm355_vm2 }
  0x8c   : > { %vm458_vm14 = vmand %vm443_vm10, %vm370_vm3 }
  0x8d   : > { %vm472_vm15 = vmand %vm443_vm10, %vm385_vm4 }
 0x110   : > { %v302_v7 = vpop.xlane.xlu0 %301 }
 0x111   : > { %v330_v8 = vpop.xlane.xlu1 %329  ;;  %v303_v9 = vsub.f32 %v300_v4, %v302_v7  ;;  %v631_v4 = vsel %vm356_vm5, 1.0, %v909_v3 }
 0x112   : > { %v331_v10 = vsub.f32 %v328_v5, %v330_v8  ;;  %v632_v8 = vsel %vm371_vm6, 1.0, %v909_v3 }
 0x113   : > { %v304_v11 = vmul.f32 1.442695, %v303_v9 }
 0x114   : > { %v332_v12 = vmul.f32 1.442695, %v331_v10  ;;  %v316_v13 = vpop.xlane.xlu0 %315 }
 0x115   : > { %725 = vpow2.f32 %v304_v11  ;;  %v317_v14 = vsub.f32 %v314_v6, %v316_v13 }
 0x116   : > { %727 = vpow2.f32 %v332_v12  ;;  %v633_v12 = vsel %vm386_vm7, 1.0, %v909_v3 }
 0x117   : > { %v318_v15 = vmul.f32 1.442695, %v317_v14 }
 0x119   : > { %729 = vpow2.f32 %v318_v15 }
 0x11f   : > { %v726_v16 = vpop.eup %725 }
 0x120   : > { %306 = vadd.xlane.f32.xlu1 %v726_v16  ;;  %v728_v17 = vpop.eup %727 }
 0x123   : > { %v730_v18 = vpop.eup %729 }
 0x124   : > { %334 = vadd.xlane.f32.xlu1 %v728_v17  ;;  %320 = vadd.xlane.f32.xlu0 %v730_v18 }
 0x1ad   : > { %v307_v19 = vpop.xlane.xlu1 %306 }
 0x1ae   : > { %731 = vlog2.f32 %v307_v19 }
 0x1af   : > { %733 = vrcp.f32 %v307_v19  ;;  %v635_v19 = vsel %vm415_vm9, 1.0, %v909_v3 }
 0x1b1   : > { %v335_v20 = vpop.xlane.xlu1 %334  ;;  %v321_v21 = vpop.xlane.xlu0 %320 }
 0x1b2   : > { %735 = vlog2.f32 %v335_v20 }
 0x1b3   : > { %737 = vrcp.f32 %v335_v20 }
 0x1b4   : > { %739 = vlog2.f32 %v321_v21 }
 0x1b5   : > { %741 = vrcp.f32 %v321_v21 }
 0x1b8   : > { %v732_v22 = vpop.eup %731 }
 0x1b9   : > { %v734_v23 = vpop.eup %733  ;;  %v309_v24 = vmul.f32 0.6931472, %v732_v22 }
 0x1ba   : > { %v312_v26 = vmul.f32 %v734_v23, %v726_v16 }
 0x1bb   : > { %v310_v25 = vsub.f32 %v303_v9, %v309_v24 }
 0x1bc   : > { %v736_v27 = vpop.eup %735 }
 0x1bd   : > { %v738_v28 = vpop.eup %737  ;;  %v345_v29 = vmul.f32 %v312_v26, %v310_v25  ;;  %v337_v35 = vmul.f32 0.6931472, %v736_v27 }
 0x1be   : > { %v740_v30 = vpop.eup %739  ;;  %v340_v31 = vmul.f32 %v738_v28, %v728_v17 }
 0x1bf   : > { %v742_v32 = vpop.eup %741  ;;  %v323_v33 = vmul.f32 0.6931472, %v740_v30  ;;  %346 = vadd.xlane.f32.xlu0 %v345_v29  ;;  %v338_v40 = vsub.f32 %v331_v10, %v337_v35 }
 0x1c0   : > { %v326_v34 = vmul.f32 %v742_v32, %v730_v18  ;;  %v376_v36 = vmul.f32 %v340_v31, %v310_v25 }
 0x1c1   : > { %v324_v37 = vsub.f32 %v317_v14, %v323_v33  ;;  %v434_v42 = vmul.f32 %v338_v40, %v312_v26  ;;  %v463_v44 = vmul.f32 %v340_v31, %v338_v40 }
 0x1c2   : > { %v361_v38 = vmul.f32 %v326_v34, %v310_v25  ;;  %v449_v45 = vmul.f32 %v338_v40, %v326_v34 }
 0x1c3   : > { %377 = vadd.xlane.f32.xlu0 %v376_v36  ;;  %v406_v39 = vmul.f32 %v326_v34, %v324_v37  ;;  %v391_v41 = vmul.f32 %v324_v37, %v312_v26  ;;  %v420_v43 = vmul.f32 %v340_v31, %v324_v37 }
 0x1c4   : > { %362 = vadd.xlane.f32.xlu1 %v361_v38  ;;  %v634_v38 = vsel %vm401_vm11, 1.0, %v909_v3 }
 0x1c7   : > { %407 = vadd.xlane.f32.xlu0 %v406_v39 }
 0x1c8   : > { %392 = vadd.xlane.f32.xlu1 %v391_v41 }
 0x1cb   : > { %435 = vadd.xlane.f32.xlu0 %v434_v42 }
 0x1cc   : > { %421 = vadd.xlane.f32.xlu1 %v420_v43 }
 0x1cf   : > { %464 = vadd.xlane.f32.xlu0 %v463_v44 }
 0x1d0   : > { %450 = vadd.xlane.f32.xlu1 %v449_v45 }
 0x24c   : > { %v347_v47 = vpop.xlane.xlu0 %346 }
 0x24d   : > { %v348_v50 = vrot.slane %v347_v47, 4 }
 0x24f   : > { %v349_v51 = vadd.f32 %v348_v50, %v347_v47 }
 0x250   : > { %v378_v52 = vpop.xlane.xlu0 %377 }
 0x251   : > { %v350_v53 = vrot.slane %v349_v51, 2  ;;  %v363_v54 = vpop.xlane.xlu1 %362  ;;  %v379_v55 = vrot.slane %v378_v52, 4 }
 0x252   : > { %v364_v56 = vrot.slane %v363_v54, 4 }
 0x253   : > { %v351_v57 = vadd.f32 %v350_v53, %v349_v51  ;;  %v380_v58 = vadd.f32 %v379_v55, %v378_v52  ;;  %v636_v55 = vsel %vm429_vm12, 1.0, %v909_v3 }
 0x254   : > { %v365_v59 = vadd.f32 %v364_v56, %v363_v54  ;;  %v408_v60 = vpop.xlane.xlu0 %407  ;;  %v637_v56 = vsel %vm444_vm13, 1.0, %v909_v3 }
 0x255   : > { %v352_v61 = vrot.slane %v351_v57, 1  ;;  %v381_v62 = vrot.slane %v380_v58, 2  ;;  %v393_v63 = vpop.xlane.xlu1 %392  ;;  %v409_v0 = vrot.slane %v408_v60, 4 }
 0x256   : > { %v366_v1 = vrot.slane %v365_v59, 2  ;;  %v394_v2 = vrot.slane %v393_v63, 4 }
 0x257   : > { %v382_v5 = vadd.f32 %v381_v62, %v380_v58  ;;  %v410_v6 = vadd.f32 %v409_v0, %v408_v60  ;;  %v353_v7 = vadd.f32 %v352_v61, %v351_v57 }
 0x258   : > { %v367_v9 = vadd.f32 %v366_v1, %v365_v59  ;;  %v395_v10 = vadd.f32 %v394_v2, %v393_v63  ;;  %v436_v11 = vpop.xlane.xlu0 %435 }
 0x259   : > { %v383_v13 = vrot.slane %v382_v5, 1  ;;  %v411_v14 = vrot.slane %v410_v6, 2  ;;  %v422_v15 = vpop.xlane.xlu1 %421  ;;  %v437_v16 = vrot.slane %v436_v11, 4  ;;  %v359_v24 = vmul.f32 %v631_v4, %v353_v7 }
 0x25a   : > { %v368_v17 = vrot.slane %v367_v9, 1  ;;  %v396_v18 = vrot.slane %v395_v10, 2  ;;  %v423_v20 = vrot.slane %v422_v15, 4  ;;  %v638_v4 = vsel %vm458_vm14, 1.0, %v909_v3 }
 0x25b   : > { %v384_v21 = vadd.f32 %v383_v13, %v382_v5  ;;  %v412_v22 = vadd.f32 %v411_v14, %v410_v6  ;;  %v438_v23 = vadd.f32 %v437_v16, %v436_v11  ;;  %v639_v5 = vsel %vm472_vm15, 1.0, %v909_v3 }
 0x25c   : > { %v369_v25 = vadd.f32 %v368_v17, %v367_v9  ;;  %v397_v26 = vadd.f32 %v396_v18, %v395_v10  ;;  %v424_v27 = vadd.f32 %v423_v20, %v422_v15  ;;  %v465_v28 = vpop.xlane.xlu0 %464 }
 0x25d   : > { %v389_v29 = vmul.f32 %v633_v12, %v384_v21  ;;  %v413_v30 = vrot.slane %v412_v22, 1  ;;  %v439_v31 = vrot.slane %v438_v23, 2  ;;  %v451_v32 = vpop.xlane.xlu1 %450  ;;  %v466_v33 = vrot.slane %v465_v28, 4 }
 0x25e   : > { %v374_v34 = vmul.f32 %v632_v8, %v369_v25  ;;  %v398_v35 = vrot.slane %v397_v26, 1  ;;  %v425_v36 = vrot.slane %v424_v27, 2  ;;  %v452_v37 = vrot.slane %v451_v32, 4 }
 0x25f   : > { %v414_v39 = vadd.f32 %v413_v30, %v412_v22  ;;  %v440_v40 = vadd.f32 %v439_v31, %v438_v23  ;;  %v467_v41 = vadd.f32 %v466_v33, %v465_v28 }
 0x260   : > { %v375_v42 = vadd.f32 %v374_v34, %v359_v24  ;;  %v399_v43 = vadd.f32 %v398_v35, %v397_v26  ;;  %v426_v44 = vadd.f32 %v425_v36, %v424_v27  ;;  %v453_v45 = vadd.f32 %v452_v37, %v451_v32 }
 0x261   : > { %v418_v46 = vmul.f32 %v635_v19, %v414_v39  ;;  %v441_v47 = vrot.slane %v440_v40, 1  ;;  %v468_v50 = vrot.slane %v467_v41, 2 }
 0x262   : > { %v390_v51 = vadd.f32 %v389_v29, %v375_v42  ;;  %v404_v52 = vmul.f32 %v634_v38, %v399_v43  ;;  %v427_v53 = vrot.slane %v426_v44, 1  ;;  %v454_v54 = vrot.slane %v453_v45, 2 }
 0x263   : > { %v442_v57 = vadd.f32 %v441_v47, %v440_v40  ;;  %v469_v58 = vadd.f32 %v468_v50, %v467_v41 }
 0x264   : > { %v405_v59 = vadd.f32 %v404_v52, %v390_v51  ;;  %v428_v60 = vadd.f32 %v427_v53, %v426_v44  ;;  %v455_v61 = vadd.f32 %v454_v54, %v453_v45 }
 0x265   : > { %v470_v62 = vrot.slane %v469_v58, 1  ;;  %v447_v1 = vmul.f32 %v637_v56, %v442_v57 }
 0x266   : > { %v419_v63 = vadd.f32 %v418_v46, %v405_v59  ;;  %v432_v0 = vmul.f32 %v636_v55, %v428_v60  ;;  %v456_v2 = vrot.slane %v455_v61, 1 }
 0x267   : > { %v471_v6 = vadd.f32 %v470_v62, %v469_v58 }
 0x268   : > { %v433_v7 = vadd.f32 %v432_v0, %v419_v63  ;;  %v457_v8 = vadd.f32 %v456_v2, %v455_v61 }
 0x269   : > { %v475_v49 = vmul.f32 %v639_v5, %v471_v6 }
 0x26a   : > { %v448_v9 = vadd.f32 %v447_v1, %v433_v7  ;;  %v461_v10 = vmul.f32 %v638_v4, %v457_v8 }
 0x26c   : > { %v462_v11 = vadd.f32 %v461_v10, %v448_v9 }
 0x26e   : > { %v476_v12 = vadd.f32 %v475_v49, %v462_v11 }
 0x270   : > { %v478_v13 = vadd.f32 %v477_v48, %v476_v12 }
 0x272   : > { %480 = vst.msk [vmem:[%s1123_s8] sm:$0x7] %vm479_vm0, %v478_v13 }
 0x273 PF: > { %s19_s19 = sadd.s32 1, %s903_s19   ;;  %s1230_s26 = sld [smem:[#allocation9_spill]] }
 0x274   : > { %p16_p3 = scmp.ge.s32.totalorder %s19_s19, 6   ;;  %s1231_s12 = smov %s879_s13 }
 0x275   : > { %s1232_s13 = smov %s883_s14  ;;  %s1233_s14 = smov %s1004_s7 }
 0x276   : > { %s1234_s15 = smov %s895_s17  ;;  %s1235_s16 = smov %s899_s18 }
 0x277   : > { %s1236_s17 = smov %s1239_s21  ;;  %18 = sbr.rel (!%p16_p3) target bundleno = 9 (0x9), region = 100 }
 0x279   : > { %s1237_s18 = smov %s1230_s26 }
 0x27e   :  { %500 = vsyncpa [#allocation3], 1 }
 0x27f   :  { %502 = vsyncpa [#allocation3 + $0x1], 1 }
 0x280   :  { %503 = vsyncpa [#allocation5], 1 }
 0x281   :  { %505 = vsyncpa [#allocation5 + $0x1], 1 }

</bundles_post_ra>
